<compile_context>
chip_gen: v5e
topology: v5e:2x2
jax: 0.10.0
libtpu: 0.0.40
codegen_flags: <defaults>
</compile_context>

<pallas_src>
import jax
import jax.numpy as jnp
from jax.experimental import pallas as pl
from jax.experimental.pallas import tpu as pltpu


# --------------------------------------------------------------------------- #
# Kernel
# --------------------------------------------------------------------------- #
def _gru_seq_kernel(tok_ref,   # (T,)        int32 token ids, SMEM (scalar prefetch)
                    h0_ref,    # (1, H)      initial hidden state
                    w_ref,     # (Vp+H, 4H)  fused [onehot; h] -> [r, z, n_x, n_h]
                    b_ref,     # (1, 4H)     fused bias [b_r, b_z, b_in, b_hn]
                    out_ref):  # (T, H)      per-step hidden states (resident block)
    T, H = out_ref.shape
    Vp = w_ref.shape[0] - H

    # Hoist resident operands out of the (unrolled) recurrence.
    w = w_ref[...]                                       # (Vp+H, 4H)
    b = b_ref[...]                                       # (1, 4H)
    h = h0_ref[...]                                      # (1, H)
    lane_ids = jax.lax.broadcasted_iota(jnp.int32, (1, Vp), 1)

    # TODO(synk): for long sequences switch this static unroll to a chunked
    # lax.fori_loop (or a grid axis) to bound trace/compile time.
    for t in range(T):                                   # T small & static
        tok = tok_ref[t]                                 # SMEM scalar read
        onehot = (lane_ids == tok).astype(jnp.float32)   # (1, Vp)  VPU
        xh = jnp.concatenate([onehot, h], axis=-1)       # (1, Vp+H)
        # Single fused MXU op: embedding lookup + input proj + hidden proj.
        g = jnp.dot(xh, w, preferred_element_type=jnp.float32) + b   # (1, 4H)

        r = jax.nn.sigmoid(g[:, 0:H])
        z = jax.nn.sigmoid(g[:, H:2 * H])
        n = jnp.tanh(g[:, 2 * H:3 * H] + r * g[:, 3 * H:4 * H])
        h = (1.0 - z) * n + z * h                        # PyTorch GRU update

        out_ref[pl.ds(t, 1), :] = h                      # static row store


# --------------------------------------------------------------------------- #
# Wrappers
# --------------------------------------------------------------------------- #
def encoder_rnn_forward_seq(tokens, hidden, params):
    """Run the encoder GRU over a whole token sequence in one pallas_call.

    tokens: (T,) int32 token ids; hidden: (1, 1, H) f32 initial state.
    Returns (outputs (T, 1, H), final_hidden (1, 1, H)).
    """
    w_big = params["w_big"]                              # (Vp+H, 4H)
    b_fused = params["b_fused"]                          # (1, 4H)
    H = params["embedding"].shape[1]
    T = int(tokens.shape[0])

    tok = jnp.asarray(tokens, jnp.int32).reshape(T)
    h0 = hidden.reshape(1, H).astype(jnp.float32)

    out = pl.pallas_call(
        _gru_seq_kernel,
        out_shape=jax.ShapeDtypeStruct((T, H), jnp.float32),
        grid_spec=pltpu.PrefetchScalarGridSpec(
            num_scalar_prefetch=1,
            grid=(1,),
            in_specs=[
                # Everything resident in VMEM for the whole (single) grid step.
                pl.BlockSpec((1, H), lambda i, tok_ref: (0, 0)),
                pl.BlockSpec(w_big.shape, lambda i, tok_ref: (0, 0)),
                pl.BlockSpec((1, 4 * H), lambda i, tok_ref: (0, 0)),
            ],
            out_specs=pl.BlockSpec((T, H), lambda i, tok_ref: (0, 0)),
        ),
        compiler_params=pltpu.CompilerParams(
            dimension_semantics=("arbitrary",)),
    )(tok, h0, w_big, b_fused)

    outputs = out.reshape(T, 1, H)
    final_hidden = out[T - 1].reshape(1, 1, H)
    return outputs, final_hidden


def encoder_rnn_forward(token, hidden, params):
    """Single-step forward matching the original EncoderRNN.forward signature."""
    tokens = jnp.asarray(token, jnp.int32).reshape(1)
    outputs, hid = encoder_rnn_forward_seq(tokens, hidden, params)
    return outputs[0:1].reshape(1, 1, -1), hid


# --------------------------------------------------------------------------- #
# Parameter construction (all fusion done ONCE at init, not per forward call)
# --------------------------------------------------------------------------- #
def make_fused_weights(embedding, weight_ih, weight_hh, bias_ih, bias_hh):
    """Fuse embedding + torch.nn.GRU weights into one (Vp+H, 4H) matrix + bias.

    Row blocks: [emb @ W_x ; W_h], column blocks: [r, z, n_x, n_h], so that for
    oh = [onehot(tok), h] (1, Vp+H):  oh @ W_big + b_fused =
      [i_r+h_r+b_ir+b_hr,  i_z+h_z+b_iz+b_hz,  i_n+b_in,  h_n+b_hn].
    """
    H = weight_ih.shape[1]
    V = embedding.shape[0]
    Vp = ((V + 7) // 8) * 8                                   # pad vocab rows to sublane multiple
    zeros = jnp.zeros((H, H), jnp.float32)

    wih_r, wih_z, wih_n = weight_ih[:H], weight_ih[H:2 * H], weight_ih[2 * H:]
    whh_r, whh_z, whh_n = weight_hh[:H], weight_hh[H:2 * H], weight_hh[2 * H:]

    w_x = jnp.concatenate([wih_r.T, wih_z.T, wih_n.T, zeros], axis=1)   # (H, 4H), applied to x
    w_h = jnp.concatenate([whh_r.T, whh_z.T, zeros, whh_n.T], axis=1)   # (H, 4H), applied to h

    # Fold the embedding lookup into the x-projection (exact per-row identity).
    e_proj = jnp.dot(embedding.astype(jnp.float32), w_x,
                     precision=jax.lax.Precision.HIGHEST)               # (V, 4H)
    e_proj = jnp.pad(e_proj, ((0, Vp - V), (0, 0)))                     # (Vp, 4H)
    w_big = jnp.concatenate([e_proj, w_h], axis=0)                      # (Vp+H, 4H)

    b_fused = jnp.concatenate([
        bias_ih[:H] + bias_hh[:H],
        bias_ih[H:2 * H] + bias_hh[H:2 * H],
        bias_ih[2 * H:],
        bias_hh[2 * H:],
    ]).reshape(1, 4 * H)
    # TODO(synk): on v6e/v7x store w_big bf16 (MXU-native) to halve HBM traffic;
    # kept f32 here for exact parity with the f32 reference.
    return w_big, b_fused


def init_params(key, input_size, hidden_size):
    """Deterministic init; shapes match nn.Embedding(V, H) + nn.GRU(H, H)."""
    k_emb, k_wih, k_whh, k_bih, k_bhh = jax.random.split(key, 5)
    bound = 1.0 / jnp.sqrt(hidden_size)
    embedding = jax.random.normal(k_emb, (input_size, hidden_size), jnp.float32)
    weight_ih = jax.random.uniform(k_wih, (3 * hidden_size, hidden_size),
                                   jnp.float32, -bound, bound)
    weight_hh = jax.random.uniform(k_whh, (3 * hidden_size, hidden_size),
                                   jnp.float32, -bound, bound)
    bias_ih = jax.random.uniform(k_bih, (3 * hidden_size,), jnp.float32, -bound, bound)
    bias_hh = jax.random.uniform(k_bhh, (3 * hidden_size,), jnp.float32, -bound, bound)
    w_big, b_fused = make_fused_weights(embedding, weight_ih, weight_hh, bias_ih, bias_hh)
    return {
        "embedding": embedding,
        "weight_ih": weight_ih, "weight_hh": weight_hh,
        "bias_ih": bias_ih, "bias_hh": bias_hh,
        "w_big": w_big, "b_fused": b_fused,
    }


# --------------------------------------------------------------------------- #
# Pure-JAX reference (torch.nn.Embedding + torch.nn.GRU semantics)
# --------------------------------------------------------------------------- #
def _reference_forward_seq(tokens, hidden, params):
    H = params["embedding"].shape[1]

    def step(h, tok):
        x = params["embedding"][tok].reshape(1, H)
        gi = x @ params["weight_ih"].T + params["bias_ih"]
        gh = h @ params["weight_hh"].T + params["bias_hh"]
        i_r, i_z, i_n = gi[:, :H], gi[:, H:2 * H], gi[:, 2 * H:]
        h_r, h_z, h_n = gh[:, :H], gh[:, H:2 * H], gh[:, 2 * H:]
        r = jax.nn.sigmoid(i_r + h_r)
        z = jax.nn.sigmoid(i_z + h_z)
        n = jnp.tanh(i_n + r * h_n)
        h_new = (1.0 - z) * n + z * h
        return h_new, h_new

    h_final, outs = jax.lax.scan(step, hidden.reshape(1, H), tokens)
    T = tokens.shape[0]
    return outs.reshape(T, 1, H), h_final.reshape(1, 1, H)


# --------------------------------------------------------------------------- #
if __name__ == "__main__":
    input_size = 16       # vocabulary size
    hidden_size = 32
    seq_len = 8

    key = jax.random.PRNGKey(0)
    k_params, k_tok = jax.random.split(key)
    params = init_params(k_params, input_size, hidden_size)

    tokens = jax.random.randint(k_tok, (seq_len,), 0, input_size, dtype=jnp.int32)
    hidden0 = jnp.zeros((1, 1, hidden_size), jnp.float32)          # initHidden()

    # Full-sequence forward: ONE pallas_call, recurrence unrolled in-kernel.
    outputs, hidden = encoder_rnn_forward_seq(tokens, hidden0, params)
    outputs = jax.block_until_ready(outputs)
    hidden = jax.block_until_ready(hidden)

    ref_out, ref_hid = _reference_forward_seq(tokens, hidden0, params)
    assert outputs.shape == (seq_len, 1, hidden_size)
    assert hidden.shape == (1, 1, hidden_size)
    assert jnp.allclose(outputs, ref_out, atol=1e-4, rtol=1e-4)
    assert jnp.allclose(hidden, ref_hid, atol=1e-4, rtol=1e-4)

    # Single-step forward matching the original EncoderRNN.forward signature.
    out1, hid1 = encoder_rnn_forward(tokens[0], hidden0, params)
    out1 = jax.block_until_ready(out1)
    assert out1.shape == (1, 1, hidden_size) and hid1.shape == (1, 1, hidden_size)
    assert jnp.allclose(out1, ref_out[0:1], atol=1e-4, rtol=1e-4)
    assert jnp.allclose(hid1, ref_out[0:1], atol=1e-4, rtol=1e-4)

    print("KERNEL_OK")
</pallas_src>

<mosaic_0001>
module attributes {stable_mosaic.version = 11 : i64} {
  func.func @_gru_seq_kernel(%arg0: i32, %arg1: memref<8xi32, #tpu.memory_space<smem>>, %arg2: memref<1x32xf32, #tpu.memory_space<vmem>>, %arg3: memref<48x128xf32, #tpu.memory_space<vmem>>, %arg4: memref<1x128xf32, #tpu.memory_space<vmem>>, %arg5: memref<8x32xf32, #tpu.memory_space<vmem>>) attributes {dimension_semantics = [#tpu.dimension_semantics<arbitrary>], iteration_bounds = array<i64: 1>, scalar_prefetch = 1 : i64, scratch_operands = 0 : i64, tpu.core_type = #tpu.core_type<tc>, window_params = [{pipeline_mode = #tpu.pipeline_mode<synchronous>, transform_indices = @transform_0, window_bounds = array<i64: 1, 32>}, {pipeline_mode = #tpu.pipeline_mode<synchronous>, transform_indices = @transform_1, window_bounds = array<i64: 48, 128>}, {pipeline_mode = #tpu.pipeline_mode<synchronous>, transform_indices = @transform_2, window_bounds = array<i64: 1, 128>}, {pipeline_mode = #tpu.pipeline_mode<synchronous>, transform_indices = @transform_3, window_bounds = array<i64: 8, 32>}]} {
    %c0 = arith.constant 0 : index
    %c0_0 = arith.constant 0 : index
    %0 = vector.load %arg3[%c0, %c0_0] : memref<48x128xf32, #tpu.memory_space<vmem>>, vector<48x128xf32>
    %c0_1 = arith.constant 0 : index
    %c0_2 = arith.constant 0 : index
    %1 = vector.load %arg4[%c0_1, %c0_2] : memref<1x128xf32, #tpu.memory_space<vmem>>, vector<1x128xf32>
    %c0_3 = arith.constant 0 : index
    %c0_4 = arith.constant 0 : index
    %2 = vector.load %arg2[%c0_3, %c0_4] : memref<1x32xf32, #tpu.memory_space<vmem>>, vector<1x32xf32>
    %3 = tpu.iota {dimensions = array<i32: 1>} : vector<1x16xi32>
    %c0_5 = arith.constant 0 : index
    %4 = memref.load %arg1[%c0_5] : memref<8xi32, #tpu.memory_space<smem>>
    %5 = vector.broadcast %4 : i32 to vector<1x16xi32>
    %6 = arith.cmpi eq, %3, %5 : vector<1x16xi32>
    %7 = arith.extui %6 : vector<1x16xi1> to vector<1x16xi32>
    %8 = arith.sitofp %7 : vector<1x16xi32> to vector<1x16xf32>
    %9 = tpu.concatenate %8, %2 in 1 : vector<1x16xf32>, vector<1x32xf32> -> vector<1x48xf32>
    %cst = arith.constant dense<0.000000e+00> : vector<1x128xf32>
    %10 = tpu.matmul %9, %0, %cst {dimension_numbers = #tpu.dot_dimension_numbers<[1], [0], [0], [1], [0, 0, 1, 1], [], []>} : vector<1x48xf32>, vector<48x128xf32>, vector<1x128xf32> -> vector<1x128xf32>
    %11 = arith.addf %10, %1 : vector<1x128xf32>
    %12 = vector.extract_strided_slice %11 {offsets = [0, 0], sizes = [1, 32], strides = [1, 1]} : vector<1x128xf32> to vector<1x32xf32>
    %13 = arith.negf %12 : vector<1x32xf32>
    %14 = math.exp %13 : vector<1x32xf32>
    %cst_6 = arith.constant 1.000000e+00 : f32
    %15 = vector.broadcast %cst_6 : f32 to vector<1x32xf32>
    %16 = arith.addf %15, %14 : vector<1x32xf32>
    %17 = arith.divf %15, %16 : vector<1x32xf32>
    %18 = vector.extract_strided_slice %11 {offsets = [0, 32], sizes = [1, 32], strides = [1, 1]} : vector<1x128xf32> to vector<1x32xf32>
    %19 = arith.negf %18 : vector<1x32xf32>
    %20 = math.exp %19 : vector<1x32xf32>
    %cst_7 = arith.constant 1.000000e+00 : f32
    %21 = vector.broadcast %cst_7 : f32 to vector<1x32xf32>
    %22 = arith.addf %21, %20 : vector<1x32xf32>
    %23 = arith.divf %21, %22 : vector<1x32xf32>
    %24 = vector.extract_strided_slice %11 {offsets = [0, 64], sizes = [1, 32], strides = [1, 1]} : vector<1x128xf32> to vector<1x32xf32>
    %25 = vector.extract_strided_slice %11 {offsets = [0, 96], sizes = [1, 32], strides = [1, 1]} : vector<1x128xf32> to vector<1x32xf32>
    %26 = arith.mulf %17, %25 : vector<1x32xf32>
    %27 = arith.addf %24, %26 : vector<1x32xf32>
    %28 = math.tanh %27 : vector<1x32xf32>
    %cst_8 = arith.constant 1.000000e+00 : f32
    %29 = vector.broadcast %cst_8 : f32 to vector<1x32xf32>
    %30 = arith.subf %29, %23 : vector<1x32xf32>
    %31 = arith.mulf %30, %28 : vector<1x32xf32>
    %32 = arith.mulf %23, %2 : vector<1x32xf32>
    %33 = arith.addf %31, %32 : vector<1x32xf32>
    %c0_9 = arith.constant 0 : index
    %c0_10 = arith.constant 0 : index
    %34 = vector.load %arg5[%c0_9, %c0_10] : memref<8x32xf32, #tpu.memory_space<vmem>>, vector<1x32xf32>
    tpu.vector_store %arg5[%c0_9, %c0_10], %33 {strides = array<i32>} : memref<8x32xf32, #tpu.memory_space<vmem>>, vector<1x32xf32>,
    %c1 = arith.constant 1 : index
    %35 = memref.load %arg1[%c1] : memref<8xi32, #tpu.memory_space<smem>>
    %36 = vector.broadcast %35 : i32 to vector<1x16xi32>
    %37 = arith.cmpi eq, %3, %36 : vector<1x16xi32>
    %38 = arith.extui %37 : vector<1x16xi1> to vector<1x16xi32>
    %39 = arith.sitofp %38 : vector<1x16xi32> to vector<1x16xf32>
    %40 = tpu.concatenate %39, %33 in 1 : vector<1x16xf32>, vector<1x32xf32> -> vector<1x48xf32>
    %cst_11 = arith.constant dense<0.000000e+00> : vector<1x128xf32>
    %41 = tpu.matmul %40, %0, %cst_11 {dimension_numbers = #tpu.dot_dimension_numbers<[1], [0], [0], [1], [0, 0, 1, 1], [], []>} : vector<1x48xf32>, vector<48x128xf32>, vector<1x128xf32> -> vector<1x128xf32>
    %42 = arith.addf %41, %1 : vector<1x128xf32>
    %43 = vector.extract_strided_slice %42 {offsets = [0, 0], sizes = [1, 32], strides = [1, 1]} : vector<1x128xf32> to vector<1x32xf32>
    %44 = arith.negf %43 : vector<1x32xf32>
    %45 = math.exp %44 : vector<1x32xf32>
    %cst_12 = arith.constant 1.000000e+00 : f32
    %46 = vector.broadcast %cst_12 : f32 to vector<1x32xf32>
    %47 = arith.addf %46, %45 : vector<1x32xf32>
    %48 = arith.divf %46, %47 : vector<1x32xf32>
    %49 = vector.extract_strided_slice %42 {offsets = [0, 32], sizes = [1, 32], strides = [1, 1]} : vector<1x128xf32> to vector<1x32xf32>
    %50 = arith.negf %49 : vector<1x32xf32>
    %51 = math.exp %50 : vector<1x32xf32>
    %cst_13 = arith.constant 1.000000e+00 : f32
    %52 = vector.broadcast %cst_13 : f32 to vector<1x32xf32>
    %53 = arith.addf %52, %51 : vector<1x32xf32>
    %54 = arith.divf %52, %53 : vector<1x32xf32>
    %55 = vector.extract_strided_slice %42 {offsets = [0, 64], sizes = [1, 32], strides = [1, 1]} : vector<1x128xf32> to vector<1x32xf32>
    %56 = vector.extract_strided_slice %42 {offsets = [0, 96], sizes = [1, 32], strides = [1, 1]} : vector<1x128xf32> to vector<1x32xf32>
    %57 = arith.mulf %48, %56 : vector<1x32xf32>
    %58 = arith.addf %55, %57 : vector<1x32xf32>
    %59 = math.tanh %58 : vector<1x32xf32>
    %cst_14 = arith.constant 1.000000e+00 : f32
    %60 = vector.broadcast %cst_14 : f32 to vector<1x32xf32>
    %61 = arith.subf %60, %54 : vector<1x32xf32>
    %62 = arith.mulf %61, %59 : vector<1x32xf32>
    %63 = arith.mulf %54, %33 : vector<1x32xf32>
    %64 = arith.addf %62, %63 : vector<1x32xf32>
    %c1_15 = arith.constant 1 : index
    %c0_16 = arith.constant 0 : index
    %65 = vector.load %arg5[%c1_15, %c0_16] : memref<8x32xf32, #tpu.memory_space<vmem>>, vector<1x32xf32>
    tpu.vector_store %arg5[%c1_15, %c0_16], %64 {strides = array<i32>} : memref<8x32xf32, #tpu.memory_space<vmem>>, vector<1x32xf32>,
    %c2 = arith.constant 2 : index
    %66 = memref.load %arg1[%c2] : memref<8xi32, #tpu.memory_space<smem>>
    %67 = vector.broadcast %66 : i32 to vector<1x16xi32>
    %68 = arith.cmpi eq, %3, %67 : vector<1x16xi32>
    %69 = arith.extui %68 : vector<1x16xi1> to vector<1x16xi32>
    %70 = arith.sitofp %69 : vector<1x16xi32> to vector<1x16xf32>
    %71 = tpu.concatenate %70, %64 in 1 : vector<1x16xf32>, vector<1x32xf32> -> vector<1x48xf32>
    %cst_17 = arith.constant dense<0.000000e+00> : vector<1x128xf32>
    %72 = tpu.matmul %71, %0, %cst_17 {dimension_numbers = #tpu.dot_dimension_numbers<[1], [0], [0], [1], [0, 0, 1, 1], [], []>} : vector<1x48xf32>, vector<48x128xf32>, vector<1x128xf32> -> vector<1x128xf32>
    %73 = arith.addf %72, %1 : vector<1x128xf32>
    %74 = vector.extract_strided_slice %73 {offsets = [0, 0], sizes = [1, 32], strides = [1, 1]} : vector<1x128xf32> to vector<1x32xf32>
    %75 = arith.negf %74 : vector<1x32xf32>
    %76 = math.exp %75 : vector<1x32xf32>
    %cst_18 = arith.constant 1.000000e+00 : f32
    %77 = vector.broadcast %cst_18 : f32 to vector<1x32xf32>
    %78 = arith.addf %77, %76 : vector<1x32xf32>
    %79 = arith.divf %77, %78 : vector<1x32xf32>
    %80 = vector.extract_strided_slice %73 {offsets = [0, 32], sizes = [1, 32], strides = [1, 1]} : vector<1x128xf32> to vector<1x32xf32>
    %81 = arith.negf %80 : vector<1x32xf32>
    %82 = math.exp %81 : vector<1x32xf32>
    %cst_19 = arith.constant 1.000000e+00 : f32
    %83 = vector.broadcast %cst_19 : f32 to vector<1x32xf32>
    %84 = arith.addf %83, %82 : vector<1x32xf32>
    %85 = arith.divf %83, %84 : vector<1x32xf32>
    %86 = vector.extract_strided_slice %73 {offsets = [0, 64], sizes = [1, 32], strides = [1, 1]} : vector<1x128xf32> to vector<1x32xf32>
    %87 = vector.extract_strided_slice %73 {offsets = [0, 96], sizes = [1, 32], strides = [1, 1]} : vector<1x128xf32> to vector<1x32xf32>
    %88 = arith.mulf %79, %87 : vector<1x32xf32>
    %89 = arith.addf %86, %88 : vector<1x32xf32>
    %90 = math.tanh %89 : vector<1x32xf32>
    %cst_20 = arith.constant 1.000000e+00 : f32
    %91 = vector.broadcast %cst_20 : f32 to vector<1x32xf32>
    %92 = arith.subf %91, %85 : vector<1x32xf32>
    %93 = arith.mulf %92, %90 : vector<1x32xf32>
    %94 = arith.mulf %85, %64 : vector<1x32xf32>
    %95 = arith.addf %93, %94 : vector<1x32xf32>
    %c2_21 = arith.constant 2 : index
    %c0_22 = arith.constant 0 : index
    %96 = vector.load %arg5[%c2_21, %c0_22] : memref<8x32xf32, #tpu.memory_space<vmem>>, vector<1x32xf32>
    tpu.vector_store %arg5[%c2_21, %c0_22], %95 {strides = array<i32>} : memref<8x32xf32, #tpu.memory_space<vmem>>, vector<1x32xf32>,
    %c3 = arith.constant 3 : index
    %97 = memref.load %arg1[%c3] : memref<8xi32, #tpu.memory_space<smem>>
    %98 = vector.broadcast %97 : i32 to vector<1x16xi32>
    %99 = arith.cmpi eq, %3, %98 : vector<1x16xi32>
    %100 = arith.extui %99 : vector<1x16xi1> to vector<1x16xi32>
    %101 = arith.sitofp %100 : vector<1x16xi32> to vector<1x16xf32>
    %102 = tpu.concatenate %101, %95 in 1 : vector<1x16xf32>, vector<1x32xf32> -> vector<1x48xf32>
    %cst_23 = arith.constant dense<0.000000e+00> : vector<1x128xf32>
    %103 = tpu.matmul %102, %0, %cst_23 {dimension_numbers = #tpu.dot_dimension_numbers<[1], [0], [0], [1], [0, 0, 1, 1], [], []>} : vector<1x48xf32>, vector<48x128xf32>, vector<1x128xf32> -> vector<1x128xf32>
    %104 = arith.addf %103, %1 : vector<1x128xf32>
    %105 = vector.extract_strided_slice %104 {offsets = [0, 0], sizes = [1, 32], strides = [1, 1]} : vector<1x128xf32> to vector<1x32xf32>
    %106 = arith.negf %105 : vector<1x32xf32>
    %107 = math.exp %106 : vector<1x32xf32>
    %cst_24 = arith.constant 1.000000e+00 : f32
    %108 = vector.broadcast %cst_24 : f32 to vector<1x32xf32>
    %109 = arith.addf %108, %107 : vector<1x32xf32>
    %110 = arith.divf %108, %109 : vector<1x32xf32>
    %111 = vector.extract_strided_slice %104 {offsets = [0, 32], sizes = [1, 32], strides = [1, 1]} : vector<1x128xf32> to vector<1x32xf32>
    %112 = arith.negf %111 : vector<1x32xf32>
    %113 = math.exp %112 : vector<1x32xf32>
    %cst_25 = arith.constant 1.000000e+00 : f32
    %114 = vector.broadcast %cst_25 : f32 to vector<1x32xf32>
    %115 = arith.addf %114, %113 : vector<1x32xf32>
    %116 = arith.divf %114, %115 : vector<1x32xf32>
    %117 = vector.extract_strided_slice %104 {offsets = [0, 64], sizes = [1, 32], strides = [1, 1]} : vector<1x128xf32> to vector<1x32xf32>
    %118 = vector.extract_strided_slice %104 {offsets = [0, 96], sizes = [1, 32], strides = [1, 1]} : vector<1x128xf32> to vector<1x32xf32>
    %119 = arith.mulf %110, %118 : vector<1x32xf32>
    %120 = arith.addf %117, %119 : vector<1x32xf32>
    %121 = math.tanh %120 : vector<1x32xf32>
    %cst_26 = arith.constant 1.000000e+00 : f32
    %122 = vector.broadcast %cst_26 : f32 to vector<1x32xf32>
    %123 = arith.subf %122, %116 : vector<1x32xf32>
    %124 = arith.mulf %123, %121 : vector<1x32xf32>
    %125 = arith.mulf %116, %95 : vector<1x32xf32>
    %126 = arith.addf %124, %125 : vector<1x32xf32>
    %c3_27 = arith.constant 3 : index
    %c0_28 = arith.constant 0 : index
    %127 = vector.load %arg5[%c3_27, %c0_28] : memref<8x32xf32, #tpu.memory_space<vmem>>, vector<1x32xf32>
    tpu.vector_store %arg5[%c3_27, %c0_28], %126 {strides = array<i32>} : memref<8x32xf32, #tpu.memory_space<vmem>>, vector<1x32xf32>,
    %c4 = arith.constant 4 : index
    %128 = memref.load %arg1[%c4] : memref<8xi32, #tpu.memory_space<smem>>
    %129 = vector.broadcast %128 : i32 to vector<1x16xi32>
    %130 = arith.cmpi eq, %3, %129 : vector<1x16xi32>
    %131 = arith.extui %130 : vector<1x16xi1> to vector<1x16xi32>
    %132 = arith.sitofp %131 : vector<1x16xi32> to vector<1x16xf32>
    %133 = tpu.concatenate %132, %126 in 1 : vector<1x16xf32>, vector<1x32xf32> -> vector<1x48xf32>
    %cst_29 = arith.constant dense<0.000000e+00> : vector<1x128xf32>
    %134 = tpu.matmul %133, %0, %cst_29 {dimension_numbers = #tpu.dot_dimension_numbers<[1], [0], [0], [1], [0, 0, 1, 1], [], []>} : vector<1x48xf32>, vector<48x128xf32>, vector<1x128xf32> -> vector<1x128xf32>
    %135 = arith.addf %134, %1 : vector<1x128xf32>
    %136 = vector.extract_strided_slice %135 {offsets = [0, 0], sizes = [1, 32], strides = [1, 1]} : vector<1x128xf32> to vector<1x32xf32>
    %137 = arith.negf %136 : vector<1x32xf32>
    %138 = math.exp %137 : vector<1x32xf32>
    %cst_30 = arith.constant 1.000000e+00 : f32
    %139 = vector.broadcast %cst_30 : f32 to vector<1x32xf32>
    %140 = arith.addf %139, %138 : vector<1x32xf32>
    %141 = arith.divf %139, %140 : vector<1x32xf32>
    %142 = vector.extract_strided_slice %135 {offsets = [0, 32], sizes = [1, 32], strides = [1, 1]} : vector<1x128xf32> to vector<1x32xf32>
    %143 = arith.negf %142 : vector<1x32xf32>
    %144 = math.exp %143 : vector<1x32xf32>
    %cst_31 = arith.constant 1.000000e+00 : f32
    %145 = vector.broadcast %cst_31 : f32 to vector<1x32xf32>
    %146 = arith.addf %145, %144 : vector<1x32xf32>
    %147 = arith.divf %145, %146 : vector<1x32xf32>
    %148 = vector.extract_strided_slice %135 {offsets = [0, 64], sizes = [1, 32], strides = [1, 1]} : vector<1x128xf32> to vector<1x32xf32>
    %149 = vector.extract_strided_slice %135 {offsets = [0, 96], sizes = [1, 32], strides = [1, 1]} : vector<1x128xf32> to vector<1x32xf32>
    %150 = arith.mulf %141, %149 : vector<1x32xf32>
    %151 = arith.addf %148, %150 : vector<1x32xf32>
    %152 = math.tanh %151 : vector<1x32xf32>
    %cst_32 = arith.constant 1.000000e+00 : f32
    %153 = vector.broadcast %cst_32 : f32 to vector<1x32xf32>
    %154 = arith.subf %153, %147 : vector<1x32xf32>
    %155 = arith.mulf %154, %152 : vector<1x32xf32>
    %156 = arith.mulf %147, %126 : vector<1x32xf32>
    %157 = arith.addf %155, %156 : vector<1x32xf32>
    %c4_33 = arith.constant 4 : index
    %c0_34 = arith.constant 0 : index
    %158 = vector.load %arg5[%c4_33, %c0_34] : memref<8x32xf32, #tpu.memory_space<vmem>>, vector<1x32xf32>
    tpu.vector_store %arg5[%c4_33, %c0_34], %157 {strides = array<i32>} : memref<8x32xf32, #tpu.memory_space<vmem>>, vector<1x32xf32>,
    %c5 = arith.constant 5 : index
    %159 = memref.load %arg1[%c5] : memref<8xi32, #tpu.memory_space<smem>>
    %160 = vector.broadcast %159 : i32 to vector<1x16xi32>
    %161 = arith.cmpi eq, %3, %160 : vector<1x16xi32>
    %162 = arith.extui %161 : vector<1x16xi1> to vector<1x16xi32>
    %163 = arith.sitofp %162 : vector<1x16xi32> to vector<1x16xf32>
    %164 = tpu.concatenate %163, %157 in 1 : vector<1x16xf32>, vector<1x32xf32> -> vector<1x48xf32>
    %cst_35 = arith.constant dense<0.000000e+00> : vector<1x128xf32>
    %165 = tpu.matmul %164, %0, %cst_35 {dimension_numbers = #tpu.dot_dimension_numbers<[1], [0], [0], [1], [0, 0, 1, 1], [], []>} : vector<1x48xf32>, vector<48x128xf32>, vector<1x128xf32> -> vector<1x128xf32>
    %166 = arith.addf %165, %1 : vector<1x128xf32>
    %167 = vector.extract_strided_slice %166 {offsets = [0, 0], sizes = [1, 32], strides = [1, 1]} : vector<1x128xf32> to vector<1x32xf32>
    %168 = arith.negf %167 : vector<1x32xf32>
    %169 = math.exp %168 : vector<1x32xf32>
    %cst_36 = arith.constant 1.000000e+00 : f32
    %170 = vector.broadcast %cst_36 : f32 to vector<1x32xf32>
    %171 = arith.addf %170, %169 : vector<1x32xf32>
    %172 = arith.divf %170, %171 : vector<1x32xf32>
    %173 = vector.extract_strided_slice %166 {offsets = [0, 32], sizes = [1, 32], strides = [1, 1]} : vector<1x128xf32> to vector<1x32xf32>
    %174 = arith.negf %173 : vector<1x32xf32>
    %175 = math.exp %174 : vector<1x32xf32>
    %cst_37 = arith.constant 1.000000e+00 : f32
    %176 = vector.broadcast %cst_37 : f32 to vector<1x32xf32>
    %177 = arith.addf %176, %175 : vector<1x32xf32>
    %178 = arith.divf %176, %177 : vector<1x32xf32>
    %179 = vector.extract_strided_slice %166 {offsets = [0, 64], sizes = [1, 32], strides = [1, 1]} : vector<1x128xf32> to vector<1x32xf32>
    %180 = vector.extract_strided_slice %166 {offsets = [0, 96], sizes = [1, 32], strides = [1, 1]} : vector<1x128xf32> to vector<1x32xf32>
    %181 = arith.mulf %172, %180 : vector<1x32xf32>
    %182 = arith.addf %179, %181 : vector<1x32xf32>
    %183 = math.tanh %182 : vector<1x32xf32>
    %cst_38 = arith.constant 1.000000e+00 : f32
    %184 = vector.broadcast %cst_38 : f32 to vector<1x32xf32>
    %185 = arith.subf %184, %178 : vector<1x32xf32>
    %186 = arith.mulf %185, %183 : vector<1x32xf32>
    %187 = arith.mulf %178, %157 : vector<1x32xf32>
    %188 = arith.addf %186, %187 : vector<1x32xf32>
    %c5_39 = arith.constant 5 : index
    %c0_40 = arith.constant 0 : index
    %189 = vector.load %arg5[%c5_39, %c0_40] : memref<8x32xf32, #tpu.memory_space<vmem>>, vector<1x32xf32>
    tpu.vector_store %arg5[%c5_39, %c0_40], %188 {strides = array<i32>} : memref<8x32xf32, #tpu.memory_space<vmem>>, vector<1x32xf32>,
    %c6 = arith.constant 6 : index
    %190 = memref.load %arg1[%c6] : memref<8xi32, #tpu.memory_space<smem>>
    %191 = vector.broadcast %190 : i32 to vector<1x16xi32>
    %192 = arith.cmpi eq, %3, %191 : vector<1x16xi32>
    %193 = arith.extui %192 : vector<1x16xi1> to vector<1x16xi32>
    %194 = arith.sitofp %193 : vector<1x16xi32> to vector<1x16xf32>
    %195 = tpu.concatenate %194, %188 in 1 : vector<1x16xf32>, vector<1x32xf32> -> vector<1x48xf32>
    %cst_41 = arith.constant dense<0.000000e+00> : vector<1x128xf32>
    %196 = tpu.matmul %195, %0, %cst_41 {dimension_numbers = #tpu.dot_dimension_numbers<[1], [0], [0], [1], [0, 0, 1, 1], [], []>} : vector<1x48xf32>, vector<48x128xf32>, vector<1x128xf32> -> vector<1x128xf32>
    %197 = arith.addf %196, %1 : vector<1x128xf32>
    %198 = vector.extract_strided_slice %197 {offsets = [0, 0], sizes = [1, 32], strides = [1, 1]} : vector<1x128xf32> to vector<1x32xf32>
    %199 = arith.negf %198 : vector<1x32xf32>
    %200 = math.exp %199 : vector<1x32xf32>
    %cst_42 = arith.constant 1.000000e+00 : f32
    %201 = vector.broadcast %cst_42 : f32 to vector<1x32xf32>
    %202 = arith.addf %201, %200 : vector<1x32xf32>
    %203 = arith.divf %201, %202 : vector<1x32xf32>
    %204 = vector.extract_strided_slice %197 {offsets = [0, 32], sizes = [1, 32], strides = [1, 1]} : vector<1x128xf32> to vector<1x32xf32>
    %205 = arith.negf %204 : vector<1x32xf32>
    %206 = math.exp %205 : vector<1x32xf32>
    %cst_43 = arith.constant 1.000000e+00 : f32
    %207 = vector.broadcast %cst_43 : f32 to vector<1x32xf32>
    %208 = arith.addf %207, %206 : vector<1x32xf32>
    %209 = arith.divf %207, %208 : vector<1x32xf32>
    %210 = vector.extract_strided_slice %197 {offsets = [0, 64], sizes = [1, 32], strides = [1, 1]} : vector<1x128xf32> to vector<1x32xf32>
    %211 = vector.extract_strided_slice %197 {offsets = [0, 96], sizes = [1, 32], strides = [1, 1]} : vector<1x128xf32> to vector<1x32xf32>
    %212 = arith.mulf %203, %211 : vector<1x32xf32>
    %213 = arith.addf %210, %212 : vector<1x32xf32>
    %214 = math.tanh %213 : vector<1x32xf32>
    %cst_44 = arith.constant 1.000000e+00 : f32
    %215 = vector.broadcast %cst_44 : f32 to vector<1x32xf32>
    %216 = arith.subf %215, %209 : vector<1x32xf32>
    %217 = arith.mulf %216, %214 : vector<1x32xf32>
    %218 = arith.mulf %209, %188 : vector<1x32xf32>
    %219 = arith.addf %217, %218 : vector<1x32xf32>
    %c6_45 = arith.constant 6 : index
    %c0_46 = arith.constant 0 : index
    %220 = vector.load %arg5[%c6_45, %c0_46] : memref<8x32xf32, #tpu.memory_space<vmem>>, vector<1x32xf32>
    tpu.vector_store %arg5[%c6_45, %c0_46], %219 {strides = array<i32>} : memref<8x32xf32, #tpu.memory_space<vmem>>, vector<1x32xf32>,
    %c7 = arith.constant 7 : index
    %221 = memref.load %arg1[%c7] : memref<8xi32, #tpu.memory_space<smem>>
    %222 = vector.broadcast %221 : i32 to vector<1x16xi32>
    %223 = arith.cmpi eq, %3, %222 : vector<1x16xi32>
    %224 = arith.extui %223 : vector<1x16xi1> to vector<1x16xi32>
    %225 = arith.sitofp %224 : vector<1x16xi32> to vector<1x16xf32>
    %226 = tpu.concatenate %225, %219 in 1 : vector<1x16xf32>, vector<1x32xf32> -> vector<1x48xf32>
    %cst_47 = arith.constant dense<0.000000e+00> : vector<1x128xf32>
    %227 = tpu.matmul %226, %0, %cst_47 {dimension_numbers = #tpu.dot_dimension_numbers<[1], [0], [0], [1], [0, 0, 1, 1], [], []>} : vector<1x48xf32>, vector<48x128xf32>, vector<1x128xf32> -> vector<1x128xf32>
    %228 = arith.addf %227, %1 : vector<1x128xf32>
    %229 = vector.extract_strided_slice %228 {offsets = [0, 0], sizes = [1, 32], strides = [1, 1]} : vector<1x128xf32> to vector<1x32xf32>
    %230 = arith.negf %229 : vector<1x32xf32>
    %231 = math.exp %230 : vector<1x32xf32>
    %cst_48 = arith.constant 1.000000e+00 : f32
    %232 = vector.broadcast %cst_48 : f32 to vector<1x32xf32>
    %233 = arith.addf %232, %231 : vector<1x32xf32>
    %234 = arith.divf %232, %233 : vector<1x32xf32>
    %235 = vector.extract_strided_slice %228 {offsets = [0, 32], sizes = [1, 32], strides = [1, 1]} : vector<1x128xf32> to vector<1x32xf32>
    %236 = arith.negf %235 : vector<1x32xf32>
    %237 = math.exp %236 : vector<1x32xf32>
    %cst_49 = arith.constant 1.000000e+00 : f32
    %238 = vector.broadcast %cst_49 : f32 to vector<1x32xf32>
    %239 = arith.addf %238, %237 : vector<1x32xf32>
    %240 = arith.divf %238, %239 : vector<1x32xf32>
    %241 = vector.extract_strided_slice %228 {offsets = [0, 64], sizes = [1, 32], strides = [1, 1]} : vector<1x128xf32> to vector<1x32xf32>
    %242 = vector.extract_strided_slice %228 {offsets = [0, 96], sizes = [1, 32], strides = [1, 1]} : vector<1x128xf32> to vector<1x32xf32>
    %243 = arith.mulf %234, %242 : vector<1x32xf32>
    %244 = arith.addf %241, %243 : vector<1x32xf32>
    %245 = math.tanh %244 : vector<1x32xf32>
    %cst_50 = arith.constant 1.000000e+00 : f32
    %246 = vector.broadcast %cst_50 : f32 to vector<1x32xf32>
    %247 = arith.subf %246, %240 : vector<1x32xf32>
    %248 = arith.mulf %247, %245 : vector<1x32xf32>
    %249 = arith.mulf %240, %219 : vector<1x32xf32>
    %250 = arith.addf %248, %249 : vector<1x32xf32>
    %c7_51 = arith.constant 7 : index
    %c0_52 = arith.constant 0 : index
    %251 = vector.load %arg5[%c7_51, %c0_52] : memref<8x32xf32, #tpu.memory_space<vmem>>, vector<1x32xf32>
    tpu.vector_store %arg5[%c7_51, %c0_52], %250 {strides = array<i32>} : memref<8x32xf32, #tpu.memory_space<vmem>>, vector<1x32xf32>,
    return
  }
  func.func @transform_0(%arg0: i32, %arg1: memref<8xi32, #tpu.memory_space<smem>>) -> (i32, i32) {
    %c0_i32 = arith.constant 0 : i32
    %c0_i32_0 = arith.constant 0 : i32
    %c0_i32_1 = arith.constant 0 : i32
    return %c0_i32, %c0_i32_0 : i32, i32
  }
  func.func @transform_1(%arg0: i32, %arg1: memref<8xi32, #tpu.memory_space<smem>>) -> (i32, i32) {
    %c0_i32 = arith.constant 0 : i32
    %c0_i32_0 = arith.constant 0 : i32
    %c0_i32_1 = arith.constant 0 : i32
    return %c0_i32, %c0_i32_0 : i32, i32
  }
  func.func @transform_2(%arg0: i32, %arg1: memref<8xi32, #tpu.memory_space<smem>>) -> (i32, i32) {
    %c0_i32 = arith.constant 0 : i32
    %c0_i32_0 = arith.constant 0 : i32
    %c0_i32_1 = arith.constant 0 : i32
    return %c0_i32, %c0_i32_0 : i32, i32
  }
  func.func @transform_3(%arg0: i32, %arg1: memref<8xi32, #tpu.memory_space<smem>>) -> (i32, i32) {
    %c0_i32 = arith.constant 0 : i32
    %c0_i32_0 = arith.constant 0 : i32
    %c0_i32_1 = arith.constant 0 : i32
    return %c0_i32, %c0_i32_0 : i32, i32
  }
}

</mosaic_0001>

<bundles_post_ra>
// kernel: tpu_custom_call.1
= control target key start
LH: loop header
LB: loop body
LE: loop exit
PB: predicated region body
PF: predicated region fallthrough
CT: control target
= control target key end

     0   :  { %s874_s18 = smov [#allocation3]   ;;  %s1048_s0 = inlined_call_operand.hbm [shape: s32[8], index: 0, kind: input, shape index: {}]   ;;  %s1049_s1 = inlined_call_operand.hbm [shape: f32[1,32], index: 1, kind: input, shape index: {}]   ;;  %s1050_s2 = inlined_call_operand.hbm [shape: f32[48,128], index: 2, kind: input, shape index: {}]   ;;  %s1051_s3 = inlined_call_operand.vmem [shape: f32[1,128], index: 3, kind: input, shape index: {}]   ;;  %s1052_s4 = inlined_call_operand.hbm [shape: f32[8,32], index: 4, kind: output, shape index: {}]  }
   0x1   :  { %s10_s17 = sshll.u32 %s1048_s0, 4  ;;  %s11_s17 = int_to_ptr.hbm [resolvable:$true] %s10_s17 }
   0x2   :  { %13 = dma.hbm_to_smem %s11_s17, 16, %s874_s18, [#allocation2] }
   0x3   :  { %866 = dma.done.wait [#allocation2], 16 }
   0x4   :  { %867 = vsyncadd [#allocation2], 4294967280 }
   0x5   :  { %16 = sfence }
   0x6   :  { %17 = vsyncpa [#allocation5], 0 }
   0x7   :  { %18 = vsyncpa [#allocation8], 0 }
   0x8   :  { %19 = vsyncpa [#allocation6], 0  ;;  %s25_s21 = sshll.u32 %s1049_s1, 4  ;;  %s875_s22 = smov [#allocation4]   ;;  %s26_s21 = int_to_ptr.hbm [resolvable:$true] %s25_s21 }
   0x9   :  { %s27_s23 = sshll.u32 %s875_s22, 4  ;;  %s35_s0 = sshll.u32 %s1050_s2, 4  ;;  %s28_s23 = int_to_ptr.vmem [resolvable:$true] %s27_s23  ;;  %s36_s0 = int_to_ptr.hbm [resolvable:$true] %s35_s0 }
   0xa   :  { %30 = dma.hbm_to_vmem [thread:$0]  %s26_s21, 16, %s28_s23, [#allocation5]  }
   0xb   :  { %s876_s26 = smov [#allocation7]   ;;  %s877_s28 = smov 128  }
   0xc   :  { %s37_s27 = sshll.u32 %s876_s26, 4  ;;  %s878_s29 = smov 8   ;;  %s38_s27 = int_to_ptr.vmem [resolvable:$true] %s37_s27 }
   0xd   :  { %43 = dma.hbm_to_vmem [thread:$0]  %s36_s0, 768, %s38_s27, [#allocation8], %s877_s28, %s877_s28, %s878_s29  }
   0xe   :  { %868 = dma.done.wait [#allocation5], 16  }
   0xf   :  { %869 = vsyncadd [#allocation5], 4294967280 }
  0x10   :  { %870 = dma.done.wait [#allocation8], 768  }
  0x11   :  { %871 = vsyncadd [#allocation8], 4294966528  ;;  %v733_v0 = vld [vmem:[#allocation4] ss:$0 sm:$0xff]  ;;  %v59_v1 = vld [vmem:[#allocation7 + $0x28] sm:$0xff]  ;;  %s879_s1 = smov 16   ;;  %v62_v7 = vlaneseq }
  0x12   :  { %90 = vmatpush.msra.mxu0 %v59_v1  ;;  %v58_v2 = vld [vmem:[#allocation7 + $0x20] sm:$0xff]  ;;  %169 = vmatpush.msra.mxu1 %v59_v1  ;;  %v57_v3 = vld [vmem:[#allocation7 + $0x18] sm:$0xff]  ;;  %s880_s2 = smov 32   ;;  %v56_v4 = vld [vmem:[#allocation7 + $0x10] sm:$0xff]  ;;  %s64_s30 = sld [smem:[#allocation3]]  ;;  %v881_v10 = vmov 0.0  }
  0x13   :  { %71 = vrot.lane.b32.xlu0 %v733_v0, %s879_s1  ;;  %136 = vrot.lane.b32.xlu2 %v733_v0, %s880_s2  ;;  %v55_v5 = vld [vmem:[#allocation7 + $0x8] sm:$0xff]  ;;  %v54_v6 = vld [vmem:[#allocation7] sm:$0xff]  ;;  %v921_v8 = vand.u32 127, %v62_v7  ;;  %vm74_vm1 = vcmask 130048   ;;  %vm76_vm2 = vcmask 392192   ;;  %s883_s7 = smov 96  }
  0x14   :  { %91 = vmatpush.msra.mxu0 %v58_v2  ;;  %170 = vmatpush.msra.mxu1 %v58_v2  ;;  %v930_v14 = vld [vmem:[%s1051_s3] sm:$0x1]  ;;  %s882_s3 = smov 64   ;;  %s884_s8 = smov 112  }
  0x15   :  { %244 = vmatpush.msra.mxu2 %v59_v1  ;;  %319 = vmatpush.msra.mxu3 %v59_v1  ;;  %s693_s9 = sld [smem:[#allocation3 + $0x1]]  ;;  %s885_s16 = smov [#allocation9]  }
  0x16   :  { %92 = vmatpush.msra.mxu0 %v57_v3  ;;  %171 = vmatpush.msra.mxu1 %v57_v3  ;;  %s697_s10 = sld [smem:[#allocation3 + $0x2]]  ;;  %s677_s17 = sshll.u32 %s885_s16, 4  ;;  %s678_s17 = int_to_ptr.vmem [resolvable:$true] %s677_s17 }
  0x17   :  { %245 = vmatpush.msra.mxu2 %v58_v2  ;;  %320 = vmatpush.msra.mxu3 %v58_v2  ;;  %s701_s11 = sld [smem:[#allocation3 + $0x3]]  ;;  %s679_s20 = sshll.u32 %s1052_s4, 4  ;;  %s680_s20 = int_to_ptr.hbm [resolvable:$true] %s679_s20 }
  0x18   :  { %93 = vmatpush.msra.mxu0 %v56_v4  ;;  %172 = vmatpush.msra.mxu1 %v56_v4  ;;  %v65_v9 = vstv %s64_s30  ;;  %s705_s12 = sld [smem:[#allocation3 + $0x4]] }
  0x19   :  { %246 = vmatpush.msra.mxu2 %v57_v3  ;;  %321 = vmatpush.msra.mxu3 %v57_v3  ;;  %vm66_vm0 = vcmp.eq.s32.totalorder %v921_v8, %v65_v9  ;;  %s709_s13 = sld [smem:[#allocation3 + $0x5]] }
  0x1a   :  { %94 = vmatpush.msra.mxu0 %v55_v5  ;;  %173 = vmatpush.msra.mxu1 %v55_v5  ;;  %v690_v11 = vsel %vm66_vm0, 1.0, %v881_v10  ;;  %s713_s14 = sld [smem:[#allocation3 + $0x6]] }
  0x1b   :  { %247 = vmatpush.msra.mxu2 %v56_v4  ;;  %322 = vmatpush.msra.mxu3 %v56_v4  ;;  %v148_v41 = vstv %s693_s9  ;;  %s717_s15 = sld [smem:[#allocation3 + $0x7]] }
  0x1c   :  { %95 = vmatpush.msra.mxu0 %v54_v6  ;;  %174 = vmatpush.msra.mxu1 %v54_v6  ;;  %vm149_vm7 = vcmp.eq.s32.totalorder %v921_v8, %v148_v41 }
  0x1d   :  { %248 = vmatpush.msra.mxu2 %v55_v5  ;;  %323 = vmatpush.msra.mxu3 %v55_v5  ;;  %v694_v42 = vsel %vm149_vm7, 1.0, %v881_v10 }
  0x1e   :  { %394 = vmatpush.msrb.mxu0 %v59_v1  ;;  %469 = vmatpush.msrb.mxu1 %v59_v1 }
  0x1f   :  { %249 = vmatpush.msra.mxu2 %v54_v6  ;;  %324 = vmatpush.msra.mxu3 %v54_v6 }
  0x20   :  { %395 = vmatpush.msrb.mxu0 %v58_v2  ;;  %470 = vmatpush.msrb.mxu1 %v58_v2 }
  0x21   :  { %544 = vmatpush.msrb.mxu2 %v59_v1  ;;  %619 = vmatpush.msrb.mxu3 %v59_v1 }
  0x22   :  { %396 = vmatpush.msrb.mxu0 %v57_v3  ;;  %471 = vmatpush.msrb.mxu1 %v57_v3 }
  0x23   :  { %545 = vmatpush.msrb.mxu2 %v58_v2  ;;  %620 = vmatpush.msrb.mxu3 %v58_v2 }
  0x24   :  { %397 = vmatpush.msrb.mxu0 %v56_v4  ;;  %472 = vmatpush.msrb.mxu1 %v56_v4 }
  0x25   :  { %546 = vmatpush.msrb.mxu2 %v57_v3  ;;  %621 = vmatpush.msrb.mxu3 %v57_v3 }
  0x26   :  { %398 = vmatpush.msrb.mxu0 %v55_v5  ;;  %473 = vmatpush.msrb.mxu1 %v55_v5 }
  0x27   :  { %547 = vmatpush.msrb.mxu2 %v56_v4  ;;  %622 = vmatpush.msrb.mxu3 %v56_v4 }
  0x28   :  { %399 = vmatpush.msrb.mxu0 %v54_v6  ;;  %474 = vmatpush.msrb.mxu1 %v54_v6 }
  0x29   :  { %548 = vmatpush.msrb.mxu2 %v55_v5  ;;  %623 = vmatpush.msrb.mxu3 %v55_v5 }
  0x2b   :  { %549 = vmatpush.msrb.mxu2 %v54_v6  ;;  %624 = vmatpush.msrb.mxu3 %v54_v6  ;;  %v223_v6 = vstv %s697_s10 }
  0x2c   :  { %vm224_vm12 = vcmp.eq.s32.totalorder %v921_v8, %v223_v6 }
  0x2d   :  { %v698_v7 = vsel %vm224_vm12, 1.0, %v881_v10 }
  0x6d   :  { %v137_v35 = vpop.permute.xlu2 %136 }
  0x85   :  { %v72_v12 = vpop.permute.xlu0 %71 }
  0x86   :  { %v75_v13 = vsel %vm74_vm1, %v690_v11, %v72_v12 }
  0x87   :  { %691 = vmatmul.msk.f32.vlgmr.msra.gmra.mxu0 %vm76_vm2, %v75_v13 }
 0x104   :  { %v97_v15 = vpop.f32.mrf.mxu0 }
 0x105   :  { %v98_v16 = vadd.f32 %v97_v15, %v930_v14 }
 0x107   :  { %120 = vrot.lane.b32.xlu0 %v98_v16, %s880_s2  ;;  %v692_v17 = vmul.f32 -1.442695, %v98_v16 }
 0x109   :  { %734 = vpow2.f32 %v692_v17 }
 0x10f   :  { %v735_v18 = vpop.eup %734 }
 0x110   :  { %v103_v19 = vadd.f32 1.0, %v735_v18 }
 0x112   :  { %736 = vrcp.f32 %v103_v19  ;;  %v115_v25 = vand.u32 2147483648, %v103_v19  ;;  %vm109_vm4 = vweird.f32 %v103_v19  ;;  %v113_v26 = vand.u32 2147483647, %v103_v19 }
 0x114   :  { %v116_v28 = vor.u32 1.1754944e-38, %v115_v25  ;;  %vm114_vm6 = vcmp.eq.f32.partialorder %v113_v26, 8.507059e+37 }
 0x118   :  { %v737_v20 = vpop.eup %736 }
 0x119   :  { %v105_v21 = vmul.f32 %v737_v20, %v103_v19  ;;  %vm110_vm3 = vweird.f32 %v737_v20 }
 0x11a   :  { %vm111_vm5 = vmor %vm109_vm4, %vm110_vm3 }
 0x11b   :  { %v106_v22 = vsub.f32 1.0, %v105_v21 }
 0x11d   :  { %v107_v23 = vmul.f32 %v737_v20, %v106_v22 }
 0x11f   :  { %v108_v24 = vadd.f32 %v737_v20, %v107_v23 }
 0x121   :  { %v112_v27 = vsel %vm111_vm5, %v737_v20, %v108_v24 }
 0x122   :  { %v117_v29 = vsel %vm114_vm6, %v116_v28, %v112_v27 }
 0x123   :  { %v130_v36 = vsub.f32 1.0, %v117_v29  ;;  %v139_v38 = vmul.f32 %v137_v35, %v117_v29 }
 0x179   :  { %v121_v30 = vpop.permute.xlu0 %120 }
 0x17a   :  { %v123_v31 = vmul.f32 %v121_v30, %v117_v29 }
 0x17c   :  { %125 = vrot.lane.b32.xlu1 %v123_v31, %s882_s3 }
 0x1ee   :  { %v126_v32 = vpop.permute.xlu1 %125 }
 0x1ef   :  { %v128_v33 = vadd.f32 %v126_v32, %v98_v16 }
 0x1f1   :  { %738 = vtanh.f32 %v128_v33 }
 0x1f7   :  { %v739_v34 = vpop.eup %738 }
 0x1f8   :  { %132 = vrot.lane.b32.xlu1 %v739_v34, %s883_s7 }
 0x26a   :  { %v133_v37 = vpop.permute.xlu1 %132 }
 0x26b   :  { %v135_v39 = vmul.f32 %v133_v37, %v130_v36 }
 0x26d   :  { %v936_v40 = vadd.f32 %v139_v38, %v135_v39  ;;  %v298_v38 = vstv %s701_s11 }
 0x26e   :  { %vm299_vm3 = vcmp.eq.s32.totalorder %v921_v8, %v298_v38  ;;  %v448_v38 = vstv %s709_s13 }
 0x26f   :  { %152 = vrot.lane.b32.xlu2 %v936_v40, %s884_s8  ;;  %v702_v39 = vsel %vm299_vm3, 1.0, %v881_v10 }
 0x2c9   :  { %v153_v43 = vpop.permute.xlu2 %152 }
 0x2ca   :  { %v155_v44 = vsel %vm74_vm1, %v694_v42, %v153_v43 }
 0x2cb   :  { %695 = vmatmul.msk.f32.vlgmr.msra.gmra.mxu1 %vm76_vm2, %v155_v44 }
 0x348   :  { %v176_v45 = vpop.f32.mrf.mxu1 }
 0x349   :  { %v177_v46 = vadd.f32 %v176_v45, %v930_v14 }
 0x34b   :  { %199 = vrot.lane.b32.xlu0 %v177_v46, %s880_s2  ;;  %v696_v47 = vmul.f32 -1.442695, %v177_v46 }
 0x34d   :  { %740 = vpow2.f32 %v696_v47 }
 0x353   :  { %v741_v48 = vpop.eup %740 }
 0x354   :  { %v182_v49 = vadd.f32 1.0, %v741_v48 }
 0x356   :  { %742 = vrcp.f32 %v182_v49  ;;  %v194_v55 = vand.u32 2147483648, %v182_v49  ;;  %vm188_vm9 = vweird.f32 %v182_v49  ;;  %v192_v56 = vand.u32 2147483647, %v182_v49 }
 0x358   :  { %v195_v58 = vor.u32 1.1754944e-38, %v194_v55  ;;  %vm193_vm11 = vcmp.eq.f32.partialorder %v192_v56, 8.507059e+37 }
 0x35c   :  { %v743_v50 = vpop.eup %742 }
 0x35d   :  { %v184_v51 = vmul.f32 %v743_v50, %v182_v49  ;;  %vm189_vm8 = vweird.f32 %v743_v50 }
 0x35e   :  { %vm190_vm10 = vmor %vm188_vm9, %vm189_vm8 }
 0x35f   :  { %v185_v52 = vsub.f32 1.0, %v184_v51 }
 0x361   :  { %v186_v53 = vmul.f32 %v743_v50, %v185_v52 }
 0x363   :  { %v187_v54 = vadd.f32 %v743_v50, %v186_v53 }
 0x365   :  { %v191_v57 = vsel %vm190_vm10, %v743_v50, %v187_v54 }
 0x366   :  { %v196_v60 = vsel %vm193_vm11, %v195_v58, %v191_v57 }
 0x367   :  { %v209_v1 = vsub.f32 1.0, %v196_v60  ;;  %v215_v3 = vmul.f32 %v196_v60, %v936_v40 }
 0x3bd   :  { %v200_v59 = vpop.permute.xlu0 %199 }
 0x3be   :  { %v202_v61 = vmul.f32 %v200_v59, %v196_v60 }
 0x3c0   :  { %204 = vrot.lane.b32.xlu1 %v202_v61, %s882_s3 }
 0x432   :  { %v205_v62 = vpop.permute.xlu1 %204 }
 0x433   :  { %v207_v63 = vadd.f32 %v205_v62, %v177_v46 }
 0x435   :  { %744 = vtanh.f32 %v207_v63 }
 0x43b   :  { %v745_v0 = vpop.eup %744 }
 0x43c   :  { %211 = vrot.lane.b32.xlu2 %v745_v0, %s883_s7 }
 0x496   :  { %v212_v2 = vpop.permute.xlu2 %211 }
 0x497   :  { %v214_v4 = vmul.f32 %v212_v2, %v209_v1 }
 0x499   :  { %v949_v5 = vadd.f32 %v215_v3, %v214_v4  ;;  %v373_v4 = vstv %s705_s12 }
 0x49a   :  { %vm374_vm8 = vcmp.eq.s32.totalorder %v921_v8, %v373_v4 }
 0x49b   :  { %227 = vrot.lane.b32.xlu0 %v949_v5, %s884_s8  ;;  %v706_v6 = vsel %vm374_vm8, 1.0, %v881_v10 }
 0x50d   :  { %v228_v9 = vpop.permute.xlu0 %227 }
 0x50e   :  { %v230_v11 = vsel %vm74_vm1, %v698_v7, %v228_v9 }
 0x50f   :  { %699 = vmatmul.msk.f32.vlgmr.msra.gmra.mxu2 %vm76_vm2, %v230_v11 }
 0x592   :  { %v251_v12 = vpop.f32.mrf.mxu2 }
 0x593   :  { %v252_v13 = vadd.f32 %v251_v12, %v930_v14 }
 0x595   :  { %274 = vrot.lane.b32.xlu1 %v252_v13, %s880_s2  ;;  %v700_v15 = vmul.f32 -1.442695, %v252_v13 }
 0x597   :  { %746 = vpow2.f32 %v700_v15 }
 0x59d   :  { %v747_v16 = vpop.eup %746 }
 0x59e   :  { %v257_v17 = vadd.f32 1.0, %v747_v16 }
 0x5a0   :  { %748 = vrcp.f32 %v257_v17  ;;  %v269_v23 = vand.u32 2147483648, %v257_v17  ;;  %vm263_vm14 = vweird.f32 %v257_v17  ;;  %v267_v24 = vand.u32 2147483647, %v257_v17 }
 0x5a2   :  { %v270_v26 = vor.u32 1.1754944e-38, %v269_v23  ;;  %vm268_vm0 = vcmp.eq.f32.partialorder %v267_v24, 8.507059e+37 }
 0x5a6   :  { %v749_v18 = vpop.eup %748 }
 0x5a7   :  { %v259_v19 = vmul.f32 %v749_v18, %v257_v17  ;;  %vm264_vm13 = vweird.f32 %v749_v18 }
 0x5a8   :  { %vm265_vm15 = vmor %vm263_vm14, %vm264_vm13  ;;  %vm449_vm13 = vcmp.eq.s32.totalorder %v921_v8, %v448_v38 }
 0x5a9   :  { %v260_v20 = vsub.f32 1.0, %v259_v19 }
 0x5ab   :  { %v261_v21 = vmul.f32 %v749_v18, %v260_v20 }
 0x5ad   :  { %v262_v22 = vadd.f32 %v749_v18, %v261_v21 }
 0x5af   :  { %v266_v25 = vsel %vm265_vm15, %v749_v18, %v262_v22 }
 0x5b0   :  { %v271_v28 = vsel %vm268_vm0, %v270_v26, %v266_v25 }
 0x5b1   :  { %v284_v33 = vsub.f32 1.0, %v271_v28  ;;  %v290_v35 = vmul.f32 %v271_v28, %v949_v5 }
 0x607   :  { %v275_v27 = vpop.permute.xlu1 %274 }
 0x608   :  { %v277_v29 = vmul.f32 %v275_v27, %v271_v28 }
 0x60a   :  { %279 = vrot.lane.b32.xlu2 %v277_v29, %s882_s3 }
 0x664   :  { %v280_v30 = vpop.permute.xlu2 %279 }
 0x665   :  { %v282_v31 = vadd.f32 %v280_v30, %v252_v13 }
 0x667   :  { %750 = vtanh.f32 %v282_v31 }
 0x66d   :  { %v751_v32 = vpop.eup %750 }
 0x66e   :  { %286 = vrot.lane.b32.xlu0 %v751_v32, %s883_s7 }
 0x6e0   :  { %v287_v34 = vpop.permute.xlu0 %286 }
 0x6e1   :  { %v289_v36 = vmul.f32 %v287_v34, %v284_v33 }
 0x6e3   :  { %v962_v37 = vadd.f32 %v290_v35, %v289_v36 }
 0x6e5   :  { %302 = vrot.lane.b32.xlu1 %v962_v37, %s884_s8 }
 0x757   :  { %v303_v41 = vpop.permute.xlu1 %302 }
 0x758   :  { %v305_v42 = vsel %vm74_vm1, %v702_v39, %v303_v41  ;;  %v710_v39 = vsel %vm449_vm13, 1.0, %v881_v10 }
 0x759   :  { %703 = vmatmul.msk.f32.vlgmr.msra.gmra.mxu3 %vm76_vm2, %v305_v42 }
 0x7dc   :  { %v326_v43 = vpop.f32.mrf.mxu3 }
 0x7dd   :  { %v327_v44 = vadd.f32 %v326_v43, %v930_v14 }
 0x7df   :  { %349 = vrot.lane.b32.xlu2 %v327_v44, %s880_s2  ;;  %v704_v45 = vmul.f32 -1.442695, %v327_v44 }
 0x7e1   :  { %752 = vpow2.f32 %v704_v45 }
 0x7e7   :  { %v753_v46 = vpop.eup %752 }
 0x7e8   :  { %v332_v47 = vadd.f32 1.0, %v753_v46 }
 0x7ea   :  { %754 = vrcp.f32 %v332_v47  ;;  %v344_v53 = vand.u32 2147483648, %v332_v47  ;;  %vm338_vm5 = vweird.f32 %v332_v47  ;;  %v342_v54 = vand.u32 2147483647, %v332_v47 }
 0x7ec   :  { %v345_v56 = vor.u32 1.1754944e-38, %v344_v53  ;;  %vm343_vm7 = vcmp.eq.f32.partialorder %v342_v54, 8.507059e+37 }
 0x7f0   :  { %v755_v48 = vpop.eup %754 }
 0x7f1   :  { %v334_v49 = vmul.f32 %v755_v48, %v332_v47  ;;  %vm339_vm4 = vweird.f32 %v755_v48 }
 0x7f2   :  { %vm340_vm6 = vmor %vm338_vm5, %vm339_vm4 }
 0x7f3   :  { %v335_v50 = vsub.f32 1.0, %v334_v49 }
 0x7f5   :  { %v336_v51 = vmul.f32 %v755_v48, %v335_v50 }
 0x7f7   :  { %v337_v52 = vadd.f32 %v755_v48, %v336_v51 }
 0x7f9   :  { %v341_v55 = vsel %vm340_vm6, %v755_v48, %v337_v52 }
 0x7fa   :  { %v346_v58 = vsel %vm343_vm7, %v345_v56, %v341_v55 }
 0x7fb   :  { %v359_v63 = vsub.f32 1.0, %v346_v58  ;;  %v365_v1 = vmul.f32 %v346_v58, %v962_v37 }
 0x839   :  { %v350_v57 = vpop.permute.xlu2 %349 }
 0x83a   :  { %v352_v59 = vmul.f32 %v350_v57, %v346_v58 }
 0x83c   :  { %354 = vrot.lane.b32.xlu0 %v352_v59, %s882_s3 }
 0x8ae   :  { %v355_v60 = vpop.permute.xlu0 %354 }
 0x8af   :  { %v357_v61 = vadd.f32 %v355_v60, %v327_v44 }
 0x8b1   :  { %756 = vtanh.f32 %v357_v61 }
 0x8b7   :  { %v757_v62 = vpop.eup %756 }
 0x8b8   :  { %361 = vrot.lane.b32.xlu1 %v757_v62, %s883_s7 }
 0x92a   :  { %v362_v0 = vpop.permute.xlu1 %361 }
 0x92b   :  { %v364_v2 = vmul.f32 %v362_v0, %v359_v63 }
 0x92d   :  { %v975_v3 = vadd.f32 %v365_v1, %v364_v2 }
 0x92f   :  { %377 = vrot.lane.b32.xlu2 %v975_v3, %s884_s8 }
 0x989   :  { %v378_v7 = vpop.permute.xlu2 %377 }
 0x98a   :  { %v380_v9 = vsel %vm74_vm1, %v706_v6, %v378_v7  ;;  %v523_v6 = vstv %s713_s14 }
 0x98b   :  { %707 = vmatmul.msk.f32.vlgmr.msrb.gmra.mxu0 %vm76_vm2, %v380_v9  ;;  %vm524_vm4 = vcmp.eq.s32.totalorder %v921_v8, %v523_v6 }
 0x98c   :  { %v714_v7 = vsel %vm524_vm4, 1.0, %v881_v10 }
 0xa08   :  { %v401_v11 = vpop.f32.mrf.mxu0 }
 0xa09   :  { %v402_v12 = vadd.f32 %v401_v11, %v930_v14 }
 0xa0b   :  { %424 = vrot.lane.b32.xlu0 %v402_v12, %s880_s2  ;;  %v708_v13 = vmul.f32 -1.442695, %v402_v12 }
 0xa0d   :  { %758 = vpow2.f32 %v708_v13 }
 0xa13   :  { %v759_v15 = vpop.eup %758 }
 0xa14   :  { %v407_v16 = vadd.f32 1.0, %v759_v15 }
 0xa16   :  { %760 = vrcp.f32 %v407_v16  ;;  %v419_v22 = vand.u32 2147483648, %v407_v16  ;;  %vm413_vm10 = vweird.f32 %v407_v16  ;;  %v417_v23 = vand.u32 2147483647, %v407_v16 }
 0xa18   :  { %v420_v25 = vor.u32 1.1754944e-38, %v419_v22  ;;  %vm418_vm12 = vcmp.eq.f32.partialorder %v417_v23, 8.507059e+37 }
 0xa1c   :  { %v761_v17 = vpop.eup %760 }
 0xa1d   :  { %v409_v18 = vmul.f32 %v761_v17, %v407_v16  ;;  %vm414_vm9 = vweird.f32 %v761_v17 }
 0xa1e   :  { %vm415_vm11 = vmor %vm413_vm10, %vm414_vm9 }
 0xa1f   :  { %v410_v19 = vsub.f32 1.0, %v409_v18 }
 0xa21   :  { %v411_v20 = vmul.f32 %v761_v17, %v410_v19 }
 0xa23   :  { %v412_v21 = vadd.f32 %v761_v17, %v411_v20 }
 0xa25   :  { %v416_v24 = vsel %vm415_vm11, %v761_v17, %v412_v21 }
 0xa26   :  { %v421_v27 = vsel %vm418_vm12, %v420_v25, %v416_v24  ;;  %vm145_vm12 = vcmask 253952  }
 0xa27   :  { %v434_v32 = vsub.f32 1.0, %v421_v27  ;;  %v440_v34 = vmul.f32 %v421_v27, %v975_v3 }
 0xa7d   :  { %v425_v26 = vpop.permute.xlu0 %424 }
 0xa7e   :  { %v427_v28 = vmul.f32 %v425_v26, %v421_v27 }
 0xa80   :  { %429 = vrot.lane.b32.xlu1 %v427_v28, %s882_s3 }
 0xaf2   :  { %v430_v29 = vpop.permute.xlu1 %429 }
 0xaf3   :  { %v432_v30 = vadd.f32 %v430_v29, %v402_v12 }
 0xaf5   :  { %762 = vtanh.f32 %v432_v30 }
 0xafb   :  { %v763_v31 = vpop.eup %762 }
 0xafc   :  { %436 = vrot.lane.b32.xlu2 %v763_v31, %s883_s7 }
 0xb56   :  { %v437_v33 = vpop.permute.xlu2 %436 }
 0xb57   :  { %v439_v35 = vmul.f32 %v437_v33, %v434_v32 }
 0xb59   :  { %v988_v36 = vadd.f32 %v440_v34, %v439_v35 }
 0xb5b   :  { %452 = vrot.lane.b32.xlu0 %v988_v36, %s884_s8 }
 0xbcd   :  { %v453_v41 = vpop.permute.xlu0 %452 }
 0xbce   :  { %v455_v42 = vsel %vm74_vm1, %v710_v39, %v453_v41  ;;  %v598_v41 = vstv %s717_s15 }
 0xbcf   :  { %711 = vmatmul.msk.f32.vlgmr.msrb.gmra.mxu1 %vm76_vm2, %v455_v42  ;;  %vm599_vm9 = vcmp.eq.s32.totalorder %v921_v8, %v598_v41 }
 0xbd0   :  { %v718_v42 = vsel %vm599_vm9, 1.0, %v881_v10 }
 0xc4c   :  { %v476_v43 = vpop.f32.mrf.mxu1 }
 0xc4d   :  { %v477_v44 = vadd.f32 %v476_v43, %v930_v14 }
 0xc4f   :  { %499 = vrot.lane.b32.xlu1 %v477_v44, %s880_s2  ;;  %v712_v45 = vmul.f32 -1.442695, %v477_v44 }
 0xc51   :  { %764 = vpow2.f32 %v712_v45 }
 0xc57   :  { %v765_v46 = vpop.eup %764 }
 0xc58   :  { %v482_v47 = vadd.f32 1.0, %v765_v46 }
 0xc5a   :  { %766 = vrcp.f32 %v482_v47  ;;  %v494_v53 = vand.u32 2147483648, %v482_v47  ;;  %vm488_vm15 = vweird.f32 %v482_v47  ;;  %v492_v54 = vand.u32 2147483647, %v482_v47 }
 0xc5c   :  { %v495_v56 = vor.u32 1.1754944e-38, %v494_v53  ;;  %vm493_vm3 = vcmp.eq.f32.partialorder %v492_v54, 8.507059e+37 }
 0xc60   :  { %v767_v48 = vpop.eup %766 }
 0xc61   :  { %v484_v49 = vmul.f32 %v767_v48, %v482_v47  ;;  %vm489_vm14 = vweird.f32 %v767_v48 }
 0xc62   :  { %vm490_vm0 = vmor %vm488_vm15, %vm489_vm14 }
 0xc63   :  { %v485_v50 = vsub.f32 1.0, %v484_v49 }
 0xc65   :  { %v486_v51 = vmul.f32 %v767_v48, %v485_v50 }
 0xc67   :  { %v487_v52 = vadd.f32 %v767_v48, %v486_v51 }
 0xc69   :  { %v491_v55 = vsel %vm490_vm0, %v767_v48, %v487_v52 }
 0xc6a   :  { %v496_v58 = vsel %vm493_vm3, %v495_v56, %v491_v55 }
 0xc6b   :  { %v509_v63 = vsub.f32 1.0, %v496_v58  ;;  %v515_v1 = vmul.f32 %v496_v58, %v988_v36 }
 0xcc1   :  { %v500_v57 = vpop.permute.xlu1 %499 }
 0xcc2   :  { %v502_v59 = vmul.f32 %v500_v57, %v496_v58 }
 0xcc4   :  { %504 = vrot.lane.b32.xlu2 %v502_v59, %s882_s3 }
 0xd1e   :  { %v505_v60 = vpop.permute.xlu2 %504 }
 0xd1f   :  { %v507_v61 = vadd.f32 %v505_v60, %v477_v44 }
 0xd21   :  { %768 = vtanh.f32 %v507_v61 }
 0xd27   :  { %v769_v62 = vpop.eup %768 }
 0xd28   :  { %511 = vrot.lane.b32.xlu0 %v769_v62, %s883_s7 }
 0xd9a   :  { %v512_v0 = vpop.permute.xlu0 %511 }
 0xd9b   :  { %v514_v2 = vmul.f32 %v512_v0, %v509_v63 }
 0xd9d   :  { %v1001_v4 = vadd.f32 %v515_v1, %v514_v2 }
 0xd9f   :  { %527 = vrot.lane.b32.xlu1 %v1001_v4, %s884_s8 }
 0xe11   :  { %v528_v9 = vpop.permute.xlu1 %527 }
 0xe12   :  { %v530_v11 = vsel %vm74_vm1, %v714_v7, %v528_v9 }
 0xe13   :  { %715 = vmatmul.msk.f32.vlgmr.msrb.gmra.mxu2 %vm76_vm2, %v530_v11 }
 0xe96   :  { %v551_v12 = vpop.f32.mrf.mxu2 }
 0xe97   :  { %v552_v13 = vadd.f32 %v551_v12, %v930_v14 }
 0xe99   :  { %574 = vrot.lane.b32.xlu2 %v552_v13, %s880_s2  ;;  %v716_v15 = vmul.f32 -1.442695, %v552_v13 }
 0xe9b   :  { %770 = vpow2.f32 %v716_v15 }
 0xea1   :  { %v771_v16 = vpop.eup %770 }
 0xea2   :  { %v557_v17 = vadd.f32 1.0, %v771_v16 }
 0xea4   :  { %772 = vrcp.f32 %v557_v17  ;;  %v569_v23 = vand.u32 2147483648, %v557_v17  ;;  %vm563_vm6 = vweird.f32 %v557_v17  ;;  %v567_v24 = vand.u32 2147483647, %v557_v17 }
 0xea6   :  { %v570_v26 = vor.u32 1.1754944e-38, %v569_v23  ;;  %vm568_vm8 = vcmp.eq.f32.partialorder %v567_v24, 8.507059e+37 }
 0xeaa   :  { %v773_v18 = vpop.eup %772 }
 0xeab   :  { %v559_v19 = vmul.f32 %v773_v18, %v557_v17  ;;  %vm564_vm5 = vweird.f32 %v773_v18 }
 0xeac   :  { %vm565_vm7 = vmor %vm563_vm6, %vm564_vm5 }
 0xead   :  { %v560_v20 = vsub.f32 1.0, %v559_v19 }
 0xeaf   :  { %v561_v21 = vmul.f32 %v773_v18, %v560_v20 }
 0xeb1   :  { %v562_v22 = vadd.f32 %v773_v18, %v561_v21 }
 0xeb3   :  { %v566_v25 = vsel %vm565_vm7, %v773_v18, %v562_v22 }
 0xeb4   :  { %v571_v28 = vsel %vm568_vm8, %v570_v26, %v566_v25 }
 0xeb5   :  { %v584_v33 = vsub.f32 1.0, %v571_v28  ;;  %v590_v35 = vmul.f32 %v571_v28, %v1001_v4 }
 0xef3   :  { %v575_v27 = vpop.permute.xlu2 %574 }
 0xef4   :  { %v577_v29 = vmul.f32 %v575_v27, %v571_v28 }
 0xef6   :  { %579 = vrot.lane.b32.xlu0 %v577_v29, %s882_s3 }
 0xf68   :  { %v580_v30 = vpop.permute.xlu0 %579 }
 0xf69   :  { %v582_v31 = vadd.f32 %v580_v30, %v552_v13 }
 0xf6b   :  { %774 = vtanh.f32 %v582_v31 }
 0xf71   :  { %v775_v32 = vpop.eup %774 }
 0xf72   :  { %586 = vrot.lane.b32.xlu1 %v775_v32, %s883_s7 }
 0xfe4   :  { %v587_v34 = vpop.permute.xlu1 %586 }
 0xfe5   :  { %v589_v38 = vmul.f32 %v587_v34, %v584_v33 }
 0xfe7   :  { %v591_v39 = vadd.f32 %v590_v35, %v589_v38 }
 0xfe9   :  { %602 = vrot.lane.b32.xlu2 %v591_v39, %s884_s8 }
0x1043   :  { %v603_v43 = vpop.permute.xlu2 %602 }
0x1044   :  { %v605_v44 = vsel %vm74_vm1, %v718_v42, %v603_v43 }
0x1045   :  { %719 = vmatmul.msk.f32.vlgmr.msrb.gmra.mxu3 %vm76_vm2, %v605_v44 }
0x10c8   :  { %v626_v45 = vpop.f32.mrf.mxu3 }
0x10c9   :  { %v627_v46 = vadd.f32 %v626_v45, %v930_v14 }
0x10cb   :  { %649 = vrot.lane.b32.xlu0 %v627_v46, %s880_s2  ;;  %v720_v8 = vmul.f32 -1.442695, %v627_v46 }
0x10cd   :  { %776 = vpow2.f32 %v720_v8 }
0x10d3   :  { %142 = vrot.lane.b32.xlu0 %v936_v40, %s883_s7  ;;  %v777_v10 = vpop.eup %776 }
0x10d4   :  { %v632_v47 = vadd.f32 1.0, %v777_v10 }
0x10d6   :  { %778 = vrcp.f32 %v632_v47  ;;  %v644_v52 = vand.u32 2147483648, %v632_v47  ;;  %vm638_vm2 = vweird.f32 %v632_v47  ;;  %v642_v53 = vand.u32 2147483647, %v632_v47 }
0x10d8   :  { %v645_v54 = vor.u32 1.1754944e-38, %v644_v52  ;;  %vm643_vm11 = vcmp.eq.f32.partialorder %v642_v53, 8.507059e+37 }
0x10db   :  { %368 = vrot.lane.b32.xlu0 %v975_v3, %s883_s7 }
0x10dc   :  { %v779_v48 = vpop.eup %778 }
0x10dd   :  { %v634_v49 = vmul.f32 %v779_v48, %v632_v47  ;;  %vm639_vm1 = vweird.f32 %v779_v48 }
0x10de   :  { %vm640_vm10 = vmor %vm638_vm2, %vm639_vm1 }
0x10df   :  { %v635_v50 = vsub.f32 1.0, %v634_v49 }
0x10e1   :  { %v636_v51 = vmul.f32 %v779_v48, %v635_v50 }
0x10e3   :  { %593 = vrot.lane.b32.xlu0 %v591_v39, %s883_s7  ;;  %v637_v14 = vadd.f32 %v779_v48, %v636_v51 }
0x10e5   :  { %v641_v40 = vsel %vm640_vm10, %v779_v48, %v637_v14 }
0x10e6   :  { %v646_v55 = vsel %vm643_vm11, %v645_v54, %v641_v40 }
0x10e7   :  { %v665_v1 = vmul.f32 %v646_v55, %v591_v39 }
0x113d   :  { %v650_v3 = vpop.permute.xlu0 %649 }
0x113e   :  { %v652_v56 = vmul.f32 %v650_v3, %v646_v55 }
0x1140   :  { %654 = vrot.lane.b32.xlu1 %v652_v56, %s882_s3 }
0x1145   :  { %v143_v57 = vpop.permute.xlu0 %142 }
0x1146   :  { %146 = vst.msk [vmem:[#allocation9] sm:$0x1] %vm145_vm12, %v143_v57 }
0x1148   :  { %218 = vrot.lane.b32.xlu1 %v949_v5, %s883_s7  ;;  %v659_v5 = vsub.f32 1.0, %v646_v55 }
0x114d   :  { %v369_v58 = vpop.permute.xlu0 %368 }
0x114e   :  { %371 = vst.msk [vmem:[#allocation9 + $0x3] sm:$0x1] %vm145_vm12, %v369_v58 }
0x1150   :  { %443 = vrot.lane.b32.xlu1 %v988_v36, %s883_s7 }
0x1155   :  { %v594_v59 = vpop.permute.xlu0 %593 }
0x1156   :  { %596 = vst.msk [vmem:[#allocation9 + $0x6] sm:$0x1] %vm145_vm12, %v594_v59 }
0x11b2   :  { %v655_v60 = vpop.permute.xlu1 %654 }
0x11b3   :  { %v657_v61 = vadd.f32 %v655_v60, %v627_v46 }
0x11b5   :  { %780 = vtanh.f32 %v657_v61 }
0x11ba   :  { %v219_v62 = vpop.permute.xlu1 %218 }
0x11bb   :  { %v781_v63 = vpop.eup %780  ;;  %221 = vst.msk [vmem:[#allocation9 + $0x1] sm:$0x1] %vm145_vm12, %v219_v62 }
0x11bc   :  { %661 = vrot.lane.b32.xlu2 %v781_v63, %s883_s7 }
0x11c2   :  { %v444_v0 = vpop.permute.xlu1 %443 }
0x11c3   :  { %446 = vst.msk [vmem:[#allocation9 + $0x4] sm:$0x1] %vm145_vm12, %v444_v0 }
0x11c4   :  { %293 = vrot.lane.b32.xlu2 %v962_v37, %s883_s7 }
0x11cc   :  { %518 = vrot.lane.b32.xlu2 %v1001_v4, %s883_s7 }
0x1216   :  { %v662_v36 = vpop.permute.xlu2 %661 }
0x1217   :  { %v664_v2 = vmul.f32 %v662_v36, %v659_v5 }
0x1219   :  { %v666_v6 = vadd.f32 %v665_v1, %v664_v2 }
0x121b   :  { %668 = vrot.lane.b32.xlu1 %v666_v6, %s883_s7 }
0x121e   :  { %v294_v7 = vpop.permute.xlu2 %293 }
0x121f   :  { %296 = vst.msk [vmem:[#allocation9 + $0x2] sm:$0x1] %vm145_vm12, %v294_v7 }
0x1226   :  { %v519_v9 = vpop.permute.xlu2 %518 }
0x1227   :  { %521 = vst.msk [vmem:[#allocation9 + $0x5] sm:$0x1] %vm145_vm12, %v519_v9 }
0x128d   :  { %v669_v37 = vpop.permute.xlu1 %668 }
0x128e   :  { %671 = vst.msk [vmem:[#allocation9 + $0x7] sm:$0x1] %vm145_vm12, %v669_v37 }
0x128f   :  { %682 = dma.vmem_to_hbm [thread:$0]  %s678_s17, 128, %s680_s20, [#allocation6]  }
0x1290   :  { %872 = dma.done.wait [#allocation6], 128  }
0x1291   :  { %873 = vsyncadd [#allocation6], 4294967168 }
0x1292   :  { %687 = vsyncpa [#allocation5], 1 }
0x1293   :  { %688 = vsyncpa [#allocation8], 1 }
0x1294   :  { %689 = vsyncpa [#allocation6], 1 }

</bundles_post_ra>
